<compile_context>
chip_gen: v7x
topology: tpu7x:2x2x1
jax: 0.10.0
libtpu: 0.0.40
codegen_flags: <defaults>
</compile_context>

<pallas_src>
import functools
import math

import jax
import jax.numpy as jnp
from jax.experimental import pallas as pl
from jax.experimental.pallas import tpu as pltpu


def _encoder_block(xq, xc, wqkv_ref, bqkv_ref, wo_ref, g_ref, bta_ref,
                   w1_ref, b1_ref, w2_ref, b2_ref, o_ref,
                   *, heads, dim_head, scale, eps, fused_qkv):
    f32 = jnp.float32
    bf16 = jnp.bfloat16
    inner = heads * dim_head

    # ---------------- Attention (q = k = v = x), + residual ----------------
    if fused_qkv:
        # Whole sequence in one tile: ONE wide QKV matmul on x.
        qkv = jnp.dot(xc.astype(bf16), wqkv_ref[...],
                      preferred_element_type=f32) + bqkv_ref[...]     # (N, 3*inner)
        q = qkv[:, :inner]
        k = qkv[:, inner:2 * inner]
        v = qkv[:, 2 * inner:]
    else:
        # Query tile: Q on the tile rows, K|V as one wide matmul on the full context.
        q = jnp.dot(xq.astype(bf16), wqkv_ref[:, :inner],
                    preferred_element_type=f32) + bqkv_ref[:, :inner]  # (TN, inner)
        kv = jnp.dot(xc.astype(bf16), wqkv_ref[:, inner:],
                     preferred_element_type=f32) + bqkv_ref[:, inner:]  # (N, 2*inner)
        k = kv[:, :inner]
        v = kv[:, inner:]

    def split_heads(t):                 # (rows, inner) -> (heads, rows, dim_head)
        return jnp.stack(
            [t[:, h * dim_head:(h + 1) * dim_head] for h in range(heads)], axis=0)

    # Pre-scale q (TN*inner elements instead of TN*N scores), cast to bf16 for the MXU.
    q3 = split_heads((q * f32(scale)).astype(bf16))                   # (H, TN, dh)
    k3 = split_heads(k.astype(bf16))                                  # (H, N,  dh)
    v3 = split_heads(v.astype(bf16))                                  # (H, N,  dh)

    # Head-batched score / context matmuls (no explicit transpose of k).
    dots = jnp.einsum('hqd,hkd->hqk', q3, k3,
                      preferred_element_type=f32)                     # (H, TN, N)
    dots = dots - jnp.max(dots, axis=-1, keepdims=True)
    p = jnp.exp(dots)
    p = p * pl.reciprocal(jnp.sum(p, axis=-1, keepdims=True), approx=True)

    ctx = jnp.einsum('hqk,hkd->hqd', p.astype(bf16), v3,
                     preferred_element_type=f32).astype(bf16)         # (H, TN, dh)

    # Merge heads -> (TN, inner) and apply Wo as ONE matmul with contraction = inner.
    ctx2 = jnp.concatenate([ctx[h] for h in range(heads)], axis=-1)   # (TN, inner)
    attn_out = jnp.dot(ctx2, wo_ref[...], preferred_element_type=f32)  # (TN, D)

    x1 = xq + attn_out

    # ------- FeedForward: LayerNorm -> Linear -> GELU -> Linear, + residual -------
    mu = jnp.mean(x1, axis=-1, keepdims=True)
    var = jnp.mean(jnp.square(x1 - mu), axis=-1, keepdims=True)
    xn = (x1 - mu) * jax.lax.rsqrt(var + f32(eps)) * g_ref[...] + bta_ref[...]

    h1 = jnp.dot(xn.astype(bf16), w1_ref[...],
                 preferred_element_type=f32) + b1_ref[...]            # (TN, mlp)
    # exact GELU (PyTorch nn.GELU default): 0.5 * x * (1 + erf(x / sqrt(2)))
    h1 = 0.5 * h1 * (1.0 + jax.lax.erf(h1 * f32(1.0 / math.sqrt(2.0))))

    y = jnp.dot(h1.astype(bf16), w2_ref[...],
                preferred_element_type=f32) + b2_ref[...]             # (TN, D)

    o_ref[0] = (x1 + y).astype(o_ref.dtype)


def encoder_layer_kernel_fused(x_ref, *refs, heads, dim_head, scale, eps):
    # x is DMA'd once; fused QKV matmul.
    x = x_ref[0]
    _encoder_block(x, x, *refs, heads=heads, dim_head=dim_head,
                   scale=scale, eps=eps, fused_qkv=True)


def encoder_layer_kernel_tiled(xq_ref, xc_ref, *refs, heads, dim_head, scale, eps):
    _encoder_block(xq_ref[0], xc_ref[0], *refs, heads=heads, dim_head=dim_head,
                   scale=scale, eps=eps, fused_qkv=False)


def _pick_seq_tile(n, target=256):
    """Largest multiple-of-8 divisor of n that is <= target, else n (full)."""
    if n <= target:
        return n
    best = n
    for t in range(8, target + 1, 8):
        if n % t == 0:
            best = t
    return best


def encoder_layer(x, params, *, heads, dim_head, seq_tile=None):
    B, N, D = x.shape
    TN = _pick_seq_tile(N) if seq_tile is None else seq_tile
    assert N % TN == 0
    n_qt = N // TN

    common = dict(heads=heads, dim_head=dim_head,
                  scale=dim_head ** (-0.5), eps=1e-5)

    def rep_spec(a):  # fully-resident weight / bias (constant block index)
        nd = a.ndim
        return pl.BlockSpec(a.shape, lambda *_, _nd=nd: (0,) * _nd)

    weight_specs = [rep_spec(p) for p in params]

    if n_qt == 1:
        # Whole sequence fits one tile: single x input (halves x DMA), fused QKV.
        kernel = functools.partial(encoder_layer_kernel_fused, **common)
        grid = (B,)
        in_specs = [pl.BlockSpec((1, N, D), lambda b: (b, 0, 0))] + weight_specs
        out_specs = pl.BlockSpec((1, N, D), lambda b: (b, 0, 0))
        dims = ("parallel",)
        args = (x,)
    else:
        kernel = functools.partial(encoder_layer_kernel_tiled, **common)
        grid = (B, n_qt)
        in_specs = [pl.BlockSpec((1, TN, D), lambda b, qi: (b, qi, 0)),   # query rows
                    pl.BlockSpec((1, N, D), lambda b, qi: (b, 0, 0))      # full context
                    ] + weight_specs
        out_specs = pl.BlockSpec((1, TN, D), lambda b, qi: (b, qi, 0))
        dims = ("parallel", "parallel")
        args = (x, x)

    return pl.pallas_call(
        kernel,
        out_shape=jax.ShapeDtypeStruct((B, N, D), x.dtype),
        grid=grid,
        in_specs=in_specs,
        out_specs=out_specs,
        compiler_params=pltpu.CompilerParams(
            dimension_semantics=dims,
            vmem_limit_bytes=64 * 1024 * 1024),
    )(*args, *params)


def make_layer_params(key, dim, heads, dim_head, mlp_dim):
    """Deterministic init mimicking nn.Linear/nn.LayerNorm defaults (weights transposed).

    Q, K and V projection weights/biases are concatenated on the host so the kernel can
    run one wide fused QKV matmul; all matmul weights are stored bf16 (f32 accumulation
    in-kernel).
    """
    inner = heads * dim_head
    ks = jax.random.split(key, 6)

    def lin(k, fan_in, fan_out):
        bound = 1.0 / math.sqrt(fan_in)
        kw, kb = jax.random.split(k)
        w = jax.random.uniform(kw, (fan_in, fan_out), jnp.float32, -bound, bound)
        b = jax.random.uniform(kb, (1, fan_out), jnp.float32, -bound, bound)
        return w, b

    wq, bq = lin(ks[0], dim, inner)
    wk, bk = lin(ks[1], dim, inner)
    wv, bv = lin(ks[2], dim, inner)
    wo, _ = lin(ks[3], inner, dim)            # to_out has bias=False
    gamma = jnp.ones((1, dim), jnp.float32)   # LayerNorm weight
    beta = jnp.zeros((1, dim), jnp.float32)   # LayerNorm bias
    w1, b1 = lin(ks[4], dim, mlp_dim)
    w2, b2 = lin(ks[5], mlp_dim, dim)

    wqkv = jnp.concatenate([wq, wk, wv], axis=1)   # (dim, 3*inner)
    bqkv = jnp.concatenate([bq, bk, bv], axis=1)   # (1, 3*inner)
    bf16 = jnp.bfloat16
    return (wqkv.astype(bf16), bqkv, wo.astype(bf16),
            gamma, beta, w1.astype(bf16), b1, w2.astype(bf16), b2)


def encoderlayer_forward(x, layer_params, *, heads, dim_head, seq_tile=None):
    for params in layer_params:
        x = encoder_layer(x, params, heads=heads, dim_head=dim_head, seq_tile=seq_tile)
    return x


def encoder_layer_ref(x, params, *, heads, dim_head):
    """Pure-JAX f32 reference of one layer (same math as the PyTorch module)."""
    wqkv, bqkv, wo, gamma, beta, w1, b1, w2, b2 = params
    inner = heads * dim_head
    f32 = jnp.float32
    wqkv, wo, w1, w2 = (w.astype(f32) for w in (wqkv, wo, w1, w2))

    B, N, _ = x.shape
    qkv = x @ wqkv + bqkv
    q, k, v = qkv[..., :inner], qkv[..., inner:2 * inner], qkv[..., 2 * inner:]

    def split(t):
        return t.reshape(B, N, heads, dim_head).transpose(0, 2, 1, 3)

    qh, kh, vh = split(q), split(k), split(v)
    dots = jnp.einsum('bhnd,bhmd->bhnm', qh, kh) * (dim_head ** (-0.5))
    attn = jax.nn.softmax(dots, axis=-1)
    ctx = jnp.einsum('bhnm,bhmd->bhnd', attn, vh)
    ctx = ctx.transpose(0, 2, 1, 3).reshape(B, N, inner)
    x1 = x + ctx @ wo

    mu = x1.mean(-1, keepdims=True)
    var = ((x1 - mu) ** 2).mean(-1, keepdims=True)
    xn = (x1 - mu) * jax.lax.rsqrt(var + 1e-5) * gamma + beta
    h1 = xn @ w1 + b1
    h1 = 0.5 * h1 * (1.0 + jax.lax.erf(h1 * f32(1.0 / math.sqrt(2.0))))
    return x1 + (h1 @ w2 + b2)


if __name__ == "__main__":
    # Small, module-consistent shapes.
    B, N = 2, 8
    dim, depth, heads, dim_head, mlp_dim = 32, 2, 4, 8, 64

    root = jax.random.PRNGKey(0)
    kx, kp, kx2 = jax.random.split(root, 3)
    x = jax.random.normal(kx, (B, N, dim), dtype=jnp.float32)

    layer_keys = jax.random.split(kp, depth)
    layer_params = [make_layer_params(k, dim, heads, dim_head, mlp_dim)
                    for k in layer_keys]

    # --- Main run (fused-QKV single-tile path) ---
    out = encoderlayer_forward(x, layer_params, heads=heads, dim_head=dim_head)
    out = jax.block_until_ready(out)
    assert out.shape == (B, N, dim) and out.dtype == jnp.float32
    assert bool(jnp.all(jnp.isfinite(out)))

    ref = x
    for p in layer_params:
        ref = encoder_layer_ref(ref, p, heads=heads, dim_head=dim_head)
    max_err = float(jnp.max(jnp.abs(out - ref)))
    assert bool(jnp.allclose(out, ref, atol=5e-2, rtol=5e-2)), max_err

    # --- Secondary check: exercise the query-tiled path (seq_tile < N) ---
    x2 = jax.random.normal(kx2, (1, 16, dim), dtype=jnp.float32)
    out2 = encoder_layer(x2, layer_params[0], heads=heads, dim_head=dim_head, seq_tile=8)
    out2 = jax.block_until_ready(out2)
    ref2 = encoder_layer_ref(x2, layer_params[0], heads=heads, dim_head=dim_head)
    max_err2 = float(jnp.max(jnp.abs(out2 - ref2)))
    assert bool(jnp.allclose(out2, ref2, atol=5e-2, rtol=5e-2)), max_err2

    print("KERNEL_OK")
</pallas_src>

<mosaic_0001>
module attributes {stable_mosaic.version = 11 : i64} {
  func.func @encoder_layer_kernel_fused(%arg0: i32, %arg1: memref<1x8x32xf32, #tpu.memory_space<vmem>>, %arg2: memref<32x96xbf16, #tpu.memory_space<vmem>>, %arg3: memref<1x96xf32, #tpu.memory_space<vmem>>, %arg4: memref<32x32xbf16, #tpu.memory_space<vmem>>, %arg5: memref<1x32xf32, #tpu.memory_space<vmem>>, %arg6: memref<1x32xf32, #tpu.memory_space<vmem>>, %arg7: memref<32x64xbf16, #tpu.memory_space<vmem>>, %arg8: memref<1x64xf32, #tpu.memory_space<vmem>>, %arg9: memref<64x32xbf16, #tpu.memory_space<vmem>>, %arg10: memref<1x32xf32, #tpu.memory_space<vmem>>, %arg11: memref<1x8x32xf32, #tpu.memory_space<vmem>>) attributes {dimension_semantics = [#tpu.dimension_semantics<parallel>], iteration_bounds = array<i64: 2>, scalar_prefetch = 0 : i64, scratch_operands = 0 : i64, tpu.core_type = #tpu.core_type<tc>, window_params = [{transform_indices = @transform_0, window_bounds = array<i64: 1, 8, 32>}, {pipeline_mode = #tpu.pipeline_mode<synchronous>, transform_indices = @transform_1, window_bounds = array<i64: 32, 96>}, {pipeline_mode = #tpu.pipeline_mode<synchronous>, transform_indices = @transform_2, window_bounds = array<i64: 1, 96>}, {pipeline_mode = #tpu.pipeline_mode<synchronous>, transform_indices = @transform_3, window_bounds = array<i64: 32, 32>}, {pipeline_mode = #tpu.pipeline_mode<synchronous>, transform_indices = @transform_4, window_bounds = array<i64: 1, 32>}, {pipeline_mode = #tpu.pipeline_mode<synchronous>, transform_indices = @transform_5, window_bounds = array<i64: 1, 32>}, {pipeline_mode = #tpu.pipeline_mode<synchronous>, transform_indices = @transform_6, window_bounds = array<i64: 32, 64>}, {pipeline_mode = #tpu.pipeline_mode<synchronous>, transform_indices = @transform_7, window_bounds = array<i64: 1, 64>}, {pipeline_mode = #tpu.pipeline_mode<synchronous>, transform_indices = @transform_8, window_bounds = array<i64: 64, 32>}, {pipeline_mode = #tpu.pipeline_mode<synchronous>, transform_indices = @transform_9, window_bounds = array<i64: 1, 32>}, {transform_indices = @transform_10, window_bounds = array<i64: 1, 8, 32>}]} {
    %c0 = arith.constant 0 : index
    %c0_0 = arith.constant 0 : index
    %c0_1 = arith.constant 0 : index
    %0 = vector.load %arg1[%c0, %c0_0, %c0_1] : memref<1x8x32xf32, #tpu.memory_space<vmem>>, vector<1x8x32xf32>
    %1 = vector.shape_cast %0 : vector<1x8x32xf32> to vector<8x32xf32>
    %2 = arith.truncf %1 : vector<8x32xf32> to vector<8x32xbf16>
    %c0_2 = arith.constant 0 : index
    %c0_3 = arith.constant 0 : index
    %3 = vector.load %arg2[%c0_2, %c0_3] : memref<32x96xbf16, #tpu.memory_space<vmem>>, vector<32x96xbf16>
    %cst = arith.constant dense<0.000000e+00> : vector<8x96xf32>
    %4 = tpu.matmul %2, %3, %cst {dimension_numbers = #tpu.dot_dimension_numbers<[1], [0], [0], [1], [0, 0, 1, 1], [], []>} : vector<8x32xbf16>, vector<32x96xbf16>, vector<8x96xf32> -> vector<8x96xf32>
    %c0_4 = arith.constant 0 : index
    %c0_5 = arith.constant 0 : index
    %5 = vector.load %arg3[%c0_4, %c0_5] : memref<1x96xf32, #tpu.memory_space<vmem>>, vector<1x96xf32>
    %6 = vector.broadcast %5 : vector<1x96xf32> to vector<8x96xf32>
    %7 = arith.addf %4, %6 : vector<8x96xf32>
    %8 = vector.extract_strided_slice %7 {offsets = [0, 0], sizes = [8, 32], strides = [1, 1]} : vector<8x96xf32> to vector<8x32xf32>
    %9 = vector.extract_strided_slice %7 {offsets = [0, 32], sizes = [8, 32], strides = [1, 1]} : vector<8x96xf32> to vector<8x32xf32>
    %10 = vector.extract_strided_slice %7 {offsets = [0, 64], sizes = [8, 32], strides = [1, 1]} : vector<8x96xf32> to vector<8x32xf32>
    %cst_6 = arith.constant 0.353553385 : f32
    %11 = vector.broadcast %cst_6 : f32 to vector<8x32xf32>
    %12 = arith.mulf %8, %11 : vector<8x32xf32>
    %13 = arith.truncf %12 : vector<8x32xf32> to vector<8x32xbf16>
    %14 = vector.extract_strided_slice %13 {offsets = [0, 0], sizes = [8, 8], strides = [1, 1]} : vector<8x32xbf16> to vector<8x8xbf16>
    %15 = vector.extract_strided_slice %13 {offsets = [0, 8], sizes = [8, 8], strides = [1, 1]} : vector<8x32xbf16> to vector<8x8xbf16>
    %16 = vector.extract_strided_slice %13 {offsets = [0, 16], sizes = [8, 8], strides = [1, 1]} : vector<8x32xbf16> to vector<8x8xbf16>
    %17 = vector.extract_strided_slice %13 {offsets = [0, 24], sizes = [8, 8], strides = [1, 1]} : vector<8x32xbf16> to vector<8x8xbf16>
    %18 = vector.shape_cast %14 : vector<8x8xbf16> to vector<1x8x8xbf16>
    %19 = vector.shape_cast %15 : vector<8x8xbf16> to vector<1x8x8xbf16>
    %20 = vector.shape_cast %16 : vector<8x8xbf16> to vector<1x8x8xbf16>
    %21 = vector.shape_cast %17 : vector<8x8xbf16> to vector<1x8x8xbf16>
    %22 = tpu.concatenate %18, %19, %20, %21 in 0 : vector<1x8x8xbf16>, vector<1x8x8xbf16>, vector<1x8x8xbf16>, vector<1x8x8xbf16> -> vector<4x8x8xbf16>
    %23 = arith.truncf %9 : vector<8x32xf32> to vector<8x32xbf16>
    %24 = vector.extract_strided_slice %23 {offsets = [0, 0], sizes = [8, 8], strides = [1, 1]} : vector<8x32xbf16> to vector<8x8xbf16>
    %25 = vector.extract_strided_slice %23 {offsets = [0, 8], sizes = [8, 8], strides = [1, 1]} : vector<8x32xbf16> to vector<8x8xbf16>
    %26 = vector.extract_strided_slice %23 {offsets = [0, 16], sizes = [8, 8], strides = [1, 1]} : vector<8x32xbf16> to vector<8x8xbf16>
    %27 = vector.extract_strided_slice %23 {offsets = [0, 24], sizes = [8, 8], strides = [1, 1]} : vector<8x32xbf16> to vector<8x8xbf16>
    %28 = vector.shape_cast %24 : vector<8x8xbf16> to vector<1x8x8xbf16>
    %29 = vector.shape_cast %25 : vector<8x8xbf16> to vector<1x8x8xbf16>
    %30 = vector.shape_cast %26 : vector<8x8xbf16> to vector<1x8x8xbf16>
    %31 = vector.shape_cast %27 : vector<8x8xbf16> to vector<1x8x8xbf16>
    %32 = tpu.concatenate %28, %29, %30, %31 in 0 : vector<1x8x8xbf16>, vector<1x8x8xbf16>, vector<1x8x8xbf16>, vector<1x8x8xbf16> -> vector<4x8x8xbf16>
    %33 = arith.truncf %10 : vector<8x32xf32> to vector<8x32xbf16>
    %34 = vector.extract_strided_slice %33 {offsets = [0, 0], sizes = [8, 8], strides = [1, 1]} : vector<8x32xbf16> to vector<8x8xbf16>
    %35 = vector.extract_strided_slice %33 {offsets = [0, 8], sizes = [8, 8], strides = [1, 1]} : vector<8x32xbf16> to vector<8x8xbf16>
    %36 = vector.extract_strided_slice %33 {offsets = [0, 16], sizes = [8, 8], strides = [1, 1]} : vector<8x32xbf16> to vector<8x8xbf16>
    %37 = vector.extract_strided_slice %33 {offsets = [0, 24], sizes = [8, 8], strides = [1, 1]} : vector<8x32xbf16> to vector<8x8xbf16>
    %38 = vector.shape_cast %34 : vector<8x8xbf16> to vector<1x8x8xbf16>
    %39 = vector.shape_cast %35 : vector<8x8xbf16> to vector<1x8x8xbf16>
    %40 = vector.shape_cast %36 : vector<8x8xbf16> to vector<1x8x8xbf16>
    %41 = vector.shape_cast %37 : vector<8x8xbf16> to vector<1x8x8xbf16>
    %42 = tpu.concatenate %38, %39, %40, %41 in 0 : vector<1x8x8xbf16>, vector<1x8x8xbf16>, vector<1x8x8xbf16>, vector<1x8x8xbf16> -> vector<4x8x8xbf16>
    "tpu.trace_start"() <{level = 10 : i32, message = "hqd,hkd->hqk"}> : () -> ()
    %cst_7 = arith.constant dense<0.000000e+00> : vector<4x8x8xf32>
    %43 = tpu.matmul %22, %32, %cst_7 {dimension_numbers = #tpu.dot_dimension_numbers<[2], [2], [1], [1], [0, 0, 0, 1, 1, 1], [0], [0]>} : vector<4x8x8xbf16>, vector<4x8x8xbf16>, vector<4x8x8xf32> -> vector<4x8x8xf32>
    "tpu.trace_stop"() : () -> ()
    %cst_8 = arith.constant dense<0xFF800000> : vector<4x8xf32>
    %44 = vector.multi_reduction <maximumf>, %43, %cst_8 [2] : vector<4x8x8xf32> to vector<4x8xf32>
    %45 = vector.shape_cast %44 : vector<4x8xf32> to vector<4x8x1xf32>
    %46 = vector.broadcast %45 : vector<4x8x1xf32> to vector<4x8x8xf32>
    %47 = arith.subf %43, %46 : vector<4x8x8xf32>
    %48 = math.exp %47 : vector<4x8x8xf32>
    %cst_9 = arith.constant dense<0.000000e+00> : vector<4x8xf32>
    %49 = vector.multi_reduction <add>, %48, %cst_9 [2] : vector<4x8x8xf32> to vector<4x8xf32>
    %50 = vector.shape_cast %49 : vector<4x8xf32> to vector<4x8x1xf32>
    %51 = tpu.reciprocal %50 {approx = true} : vector<4x8x1xf32> -> vector<4x8x1xf32>
    %52 = vector.broadcast %51 : vector<4x8x1xf32> to vector<4x8x8xf32>
    %53 = arith.mulf %48, %52 : vector<4x8x8xf32>
    %54 = arith.truncf %53 : vector<4x8x8xf32> to vector<4x8x8xbf16>
    "tpu.trace_start"() <{level = 10 : i32, message = "hqk,hkd->hqd"}> : () -> ()
    %cst_10 = arith.constant dense<0.000000e+00> : vector<4x8x8xf32>
    %55 = tpu.matmul %54, %42, %cst_10 {dimension_numbers = #tpu.dot_dimension_numbers<[2], [1], [1], [2], [0, 0, 0, 1, 1, 2], [0], [0]>} : vector<4x8x8xbf16>, vector<4x8x8xbf16>, vector<4x8x8xf32> -> vector<4x8x8xf32>
    "tpu.trace_stop"() : () -> ()
    %56 = arith.truncf %55 : vector<4x8x8xf32> to vector<4x8x8xbf16>
    %57 = vector.extract_strided_slice %56 {offsets = [0, 0, 0], sizes = [1, 8, 8], strides = [1, 1, 1]} : vector<4x8x8xbf16> to vector<1x8x8xbf16>
    %58 = vector.shape_cast %57 : vector<1x8x8xbf16> to vector<8x8xbf16>
    %59 = vector.extract_strided_slice %56 {offsets = [1, 0, 0], sizes = [1, 8, 8], strides = [1, 1, 1]} : vector<4x8x8xbf16> to vector<1x8x8xbf16>
    %60 = vector.shape_cast %59 : vector<1x8x8xbf16> to vector<8x8xbf16>
    %61 = vector.extract_strided_slice %56 {offsets = [2, 0, 0], sizes = [1, 8, 8], strides = [1, 1, 1]} : vector<4x8x8xbf16> to vector<1x8x8xbf16>
    %62 = vector.shape_cast %61 : vector<1x8x8xbf16> to vector<8x8xbf16>
    %63 = vector.extract_strided_slice %56 {offsets = [3, 0, 0], sizes = [1, 8, 8], strides = [1, 1, 1]} : vector<4x8x8xbf16> to vector<1x8x8xbf16>
    %64 = vector.shape_cast %63 : vector<1x8x8xbf16> to vector<8x8xbf16>
    %65 = tpu.concatenate %58, %60, %62, %64 in 1 : vector<8x8xbf16>, vector<8x8xbf16>, vector<8x8xbf16>, vector<8x8xbf16> -> vector<8x32xbf16>
    %c0_11 = arith.constant 0 : index
    %c0_12 = arith.constant 0 : index
    %66 = vector.load %arg4[%c0_11, %c0_12] : memref<32x32xbf16, #tpu.memory_space<vmem>>, vector<32x32xbf16>
    %cst_13 = arith.constant dense<0.000000e+00> : vector<8x32xf32>
    %67 = tpu.matmul %65, %66, %cst_13 {dimension_numbers = #tpu.dot_dimension_numbers<[1], [0], [0], [1], [0, 0, 1, 1], [], []>} : vector<8x32xbf16>, vector<32x32xbf16>, vector<8x32xf32> -> vector<8x32xf32>
    %68 = arith.addf %1, %67 : vector<8x32xf32>
    %cst_14 = arith.constant dense<0.000000e+00> : vector<8xf32>
    %69 = vector.multi_reduction <add>, %68, %cst_14 [1] : vector<8x32xf32> to vector<8xf32>
    %70 = vector.shape_cast %69 : vector<8xf32> to vector<8x1xf32>
    %cst_15 = arith.constant 3.200000e+01 : f32
    %71 = vector.broadcast %cst_15 : f32 to vector<8x1xf32>
    %72 = arith.divf %70, %71 : vector<8x1xf32>
    %73 = vector.broadcast %72 : vector<8x1xf32> to vector<8x32xf32>
    %74 = arith.subf %68, %73 : vector<8x32xf32>
    %75 = arith.mulf %74, %74 : vector<8x32xf32>
    %cst_16 = arith.constant dense<0.000000e+00> : vector<8xf32>
    %76 = vector.multi_reduction <add>, %75, %cst_16 [1] : vector<8x32xf32> to vector<8xf32>
    %77 = vector.shape_cast %76 : vector<8xf32> to vector<8x1xf32>
    %cst_17 = arith.constant 3.200000e+01 : f32
    %78 = vector.broadcast %cst_17 : f32 to vector<8x1xf32>
    %79 = arith.divf %77, %78 : vector<8x1xf32>
    %80 = vector.broadcast %72 : vector<8x1xf32> to vector<8x32xf32>
    %81 = arith.subf %68, %80 : vector<8x32xf32>
    %cst_18 = arith.constant 9.99999974E-6 : f32
    %82 = vector.broadcast %cst_18 : f32 to vector<8x1xf32>
    %83 = arith.addf %79, %82 : vector<8x1xf32>
    %84 = math.rsqrt %83 : vector<8x1xf32>
    %85 = vector.broadcast %84 : vector<8x1xf32> to vector<8x32xf32>
    %86 = arith.mulf %81, %85 : vector<8x32xf32>
    %c0_19 = arith.constant 0 : index
    %c0_20 = arith.constant 0 : index
    %87 = vector.load %arg5[%c0_19, %c0_20] : memref<1x32xf32, #tpu.memory_space<vmem>>, vector<1x32xf32>
    %88 = vector.broadcast %87 : vector<1x32xf32> to vector<8x32xf32>
    %89 = arith.mulf %86, %88 : vector<8x32xf32>
    %c0_21 = arith.constant 0 : index
    %c0_22 = arith.constant 0 : index
    %90 = vector.load %arg6[%c0_21, %c0_22] : memref<1x32xf32, #tpu.memory_space<vmem>>, vector<1x32xf32>
    %91 = vector.broadcast %90 : vector<1x32xf32> to vector<8x32xf32>
    %92 = arith.addf %89, %91 : vector<8x32xf32>
    %93 = arith.truncf %92 : vector<8x32xf32> to vector<8x32xbf16>
    %c0_23 = arith.constant 0 : index
    %c0_24 = arith.constant 0 : index
    %94 = vector.load %arg7[%c0_23, %c0_24] : memref<32x64xbf16, #tpu.memory_space<vmem>>, vector<32x64xbf16>
    %cst_25 = arith.constant dense<0.000000e+00> : vector<8x64xf32>
    %95 = tpu.matmul %93, %94, %cst_25 {dimension_numbers = #tpu.dot_dimension_numbers<[1], [0], [0], [1], [0, 0, 1, 1], [], []>} : vector<8x32xbf16>, vector<32x64xbf16>, vector<8x64xf32> -> vector<8x64xf32>
    %c0_26 = arith.constant 0 : index
    %c0_27 = arith.constant 0 : index
    %96 = vector.load %arg8[%c0_26, %c0_27] : memref<1x64xf32, #tpu.memory_space<vmem>>, vector<1x64xf32>
    %97 = vector.broadcast %96 : vector<1x64xf32> to vector<8x64xf32>
    %98 = arith.addf %95, %97 : vector<8x64xf32>
    %cst_28 = arith.constant 5.000000e-01 : f32
    %99 = vector.broadcast %cst_28 : f32 to vector<8x64xf32>
    %100 = arith.mulf %99, %98 : vector<8x64xf32>
    %cst_29 = arith.constant 0.707106769 : f32
    %101 = vector.broadcast %cst_29 : f32 to vector<8x64xf32>
    %102 = arith.mulf %98, %101 : vector<8x64xf32>
    %103 = math.erf %102 : vector<8x64xf32>
    %cst_30 = arith.constant 1.000000e+00 : f32
    %104 = vector.broadcast %cst_30 : f32 to vector<8x64xf32>
    %105 = arith.addf %104, %103 : vector<8x64xf32>
    %106 = arith.mulf %100, %105 : vector<8x64xf32>
    %107 = arith.truncf %106 : vector<8x64xf32> to vector<8x64xbf16>
    %c0_31 = arith.constant 0 : index
    %c0_32 = arith.constant 0 : index
    %108 = vector.load %arg9[%c0_31, %c0_32] : memref<64x32xbf16, #tpu.memory_space<vmem>>, vector<64x32xbf16>
    %cst_33 = arith.constant dense<0.000000e+00> : vector<8x32xf32>
    %109 = tpu.matmul %107, %108, %cst_33 {dimension_numbers = #tpu.dot_dimension_numbers<[1], [0], [0], [1], [0, 0, 1, 1], [], []>} : vector<8x64xbf16>, vector<64x32xbf16>, vector<8x32xf32> -> vector<8x32xf32>
    %c0_34 = arith.constant 0 : index
    %c0_35 = arith.constant 0 : index
    %110 = vector.load %arg10[%c0_34, %c0_35] : memref<1x32xf32, #tpu.memory_space<vmem>>, vector<1x32xf32>
    %111 = vector.broadcast %110 : vector<1x32xf32> to vector<8x32xf32>
    %112 = arith.addf %109, %111 : vector<8x32xf32>
    %113 = arith.addf %68, %112 : vector<8x32xf32>
    %c0_36 = arith.constant 0 : index
    %c0_37 = arith.constant 0 : index
    %c0_38 = arith.constant 0 : index
    %114 = vector.load %arg11[%c0_36, %c0_37, %c0_38] : memref<1x8x32xf32, #tpu.memory_space<vmem>>, vector<1x8x32xf32>
    %115 = vector.shape_cast %114 : vector<1x8x32xf32> to vector<8x32xf32>
    %116 = vector.shape_cast %113 : vector<8x32xf32> to vector<1x8x32xf32>
    tpu.vector_store %arg11[%c0_36, %c0_37, %c0_38], %116 {strides = array<i32>} : memref<1x8x32xf32, #tpu.memory_space<vmem>>, vector<1x8x32xf32>,
    return
  }
  func.func @transform_0(%arg0: i32) -> (i32, i32, i32) {
    %c0_i32 = arith.constant 0 : i32
    %c0_i32_0 = arith.constant 0 : i32
    %c0_i32_1 = arith.constant 0 : i32
    return %arg0, %c0_i32, %c0_i32_0 : i32, i32, i32
  }
  func.func @transform_1(%arg0: i32) -> (i32, i32) {
    %c0_i32 = arith.constant 0 : i32
    %c0_i32_0 = arith.constant 0 : i32
    %c0_i32_1 = arith.constant 0 : i32
    return %c0_i32, %c0_i32_0 : i32, i32
  }
  func.func @transform_2(%arg0: i32) -> (i32, i32) {
    %c0_i32 = arith.constant 0 : i32
    %c0_i32_0 = arith.constant 0 : i32
    %c0_i32_1 = arith.constant 0 : i32
    return %c0_i32, %c0_i32_0 : i32, i32
  }
  func.func @transform_3(%arg0: i32) -> (i32, i32) {
    %c0_i32 = arith.constant 0 : i32
    %c0_i32_0 = arith.constant 0 : i32
    %c0_i32_1 = arith.constant 0 : i32
    return %c0_i32, %c0_i32_0 : i32, i32
  }
  func.func @transform_4(%arg0: i32) -> (i32, i32) {
    %c0_i32 = arith.constant 0 : i32
    %c0_i32_0 = arith.constant 0 : i32
    %c0_i32_1 = arith.constant 0 : i32
    return %c0_i32, %c0_i32_0 : i32, i32
  }
  func.func @transform_5(%arg0: i32) -> (i32, i32) {
    %c0_i32 = arith.constant 0 : i32
    %c0_i32_0 = arith.constant 0 : i32
    %c0_i32_1 = arith.constant 0 : i32
    return %c0_i32, %c0_i32_0 : i32, i32
  }
  func.func @transform_6(%arg0: i32) -> (i32, i32) {
    %c0_i32 = arith.constant 0 : i32
    %c0_i32_0 = arith.constant 0 : i32
    %c0_i32_1 = arith.constant 0 : i32
    return %c0_i32, %c0_i32_0 : i32, i32
  }
  func.func @transform_7(%arg0: i32) -> (i32, i32) {
    %c0_i32 = arith.constant 0 : i32
    %c0_i32_0 = arith.constant 0 : i32
    %c0_i32_1 = arith.constant 0 : i32
    return %c0_i32, %c0_i32_0 : i32, i32
  }
  func.func @transform_8(%arg0: i32) -> (i32, i32) {
    %c0_i32 = arith.constant 0 : i32
    %c0_i32_0 = arith.constant 0 : i32
    %c0_i32_1 = arith.constant 0 : i32
    return %c0_i32, %c0_i32_0 : i32, i32
  }
  func.func @transform_9(%arg0: i32) -> (i32, i32) {
    %c0_i32 = arith.constant 0 : i32
    %c0_i32_0 = arith.constant 0 : i32
    %c0_i32_1 = arith.constant 0 : i32
    return %c0_i32, %c0_i32_0 : i32, i32
  }
  func.func @transform_10(%arg0: i32) -> (i32, i32, i32) {
    %c0_i32 = arith.constant 0 : i32
    %c0_i32_0 = arith.constant 0 : i32
    %c0_i32_1 = arith.constant 0 : i32
    return %arg0, %c0_i32, %c0_i32_0 : i32, i32, i32
  }
}

</mosaic_0001>

<bundles_post_ra>
// kernel: tpu_custom_call.1
= control target key start
LH: loop header
LB: loop body
LE: loop exit
PB: predicated region body
PF: predicated region fallthrough
CT: control target
= control target key end

     0   :  { %s2753_s0 = inlined_call_operand.hbm [shape: f32[2,8,32], index: 0, kind: input, shape index: {}]   ;;  %s2754_s1 = inlined_call_operand.hbm [shape: bf16[32,96], index: 1, kind: input, shape index: {}]   ;;  %s2755_s2 = inlined_call_operand.hbm [shape: f32[1,96], index: 2, kind: input, shape index: {}]   ;;  %s2756_s3 = inlined_call_operand.hbm [shape: bf16[32,32], index: 3, kind: input, shape index: {}]   ;;  %s2757_s4 = inlined_call_operand.hbm [shape: f32[1,32], index: 4, kind: input, shape index: {}]   ;;  %s2758_s5 = inlined_call_operand.hbm [shape: f32[1,32], index: 5, kind: input, shape index: {}]   ;;  %s2759_s6 = inlined_call_operand.hbm [shape: bf16[32,64], index: 6, kind: input, shape index: {}]   ;;  %s2760_s7 = inlined_call_operand.hbm [shape: f32[1,64], index: 7, kind: input, shape index: {}]   ;;  %s2761_s8 = inlined_call_operand.hbm [shape: bf16[64,32], index: 8, kind: input, shape index: {}]   ;;  %s2762_s9 = inlined_call_operand.hbm [shape: f32[1,32], index: 9, kind: input, shape index: {}]   ;;  %s2763_s10 = inlined_call_operand.hbm [shape: f32[2,8,32], index: 10, kind: output, shape index: {}]  }
   0x1   :  { %2771 = sst [smem:[#allocation28_spill]] %s2754_s1 }
   0x2   :  { %2772 = sst [smem:[#allocation29_spill]] %s2763_s10 }
   0x3   :  { %15 = vsyncpa [#allocation3], 0 }
   0x4   :  { %17 = vsyncpa [#allocation3 + $0x1], 0 }
   0x5   :  { %18 = vsyncpa [#allocation6], 0 }
   0x6   :  { %19 = vsyncpa [#allocation9], 0 }
   0x7   :  { %20 = vsyncpa [#allocation12], 0 }
   0x8   :  { %21 = vsyncpa [#allocation15], 0 }
   0x9   :  { %22 = vsyncpa [#allocation18], 0 }
   0xa   :  { %23 = vsyncpa [#allocation4], 0 }
   0xb   :  { %25 = vsyncpa [#allocation4 + $0x1], 0  ;;  %s2254_s13 = smov 0   ;;  %s2256_s14 = smov 0  }
   0xc   :  { %s2258_s15 = smov 0   ;;  %s2260_s16 = smov 0  }
   0xd LB: > { %s2176_s17 = smov [#allocation5]   ;;  %s2275_s19 = sadd.s32 4294967295, %s2174_s16   ;;  %s2174_s16 = sphi %s2260_s16, %s2803_s16   ;;  %s2170_s15 = sphi %s2258_s15, %s2802_s15   ;;  %s2166_s14 = sphi %s2256_s14, %s2801_s14   ;;  %s2162_s13 = sphi %s2254_s13, %s2800_s13  }
   0xe   : > { %s289_s18 = sshll.u32 %s2176_s17, 4  ;;  %p1457_p0 = scmp.ge.s32.totalorder %s2174_s16, 1  ;;  %s2280_s18 = int_to_ptr.vmem [resolvable:$true] %s289_s18 }
   0xf   : > { %p2768_p1 = scmp.eq.s32.totalorder %s2275_s19, 0  ;;  %p277_p2 = scmp.lt.s32.totalorder %s2174_s16, 3 }
  0x10   : > { %s2177_s21 = smov [#allocation8]   ;;  %s2178_s24 = smov [#allocation11]  }
  0x11   : > { %p2282_p3 = pnand %p1457_p0, %p277_p2  ;;  %s313_s22 = sshll.u32 %s2177_s21, 4  ;;  %s2295_s22 = int_to_ptr.vmem [resolvable:$true] %s313_s22 }
  0x12   : > { %s338_s25 = sshll.u32 %s2178_s24, 4  ;;  %s2776_s1 = sld [smem:[#allocation28_spill]]  ;;  %s2297_s25 = int_to_ptr.vmem [resolvable:$true] %s338_s25 }
  0x13   : > { %s2773_s20 = scalar_select %p2282_p3, 1, 0 }
  0x14   : > { %p1667_p5 = pneg %p2282_p3 }
  0x15   : > { %2774 = sst [smem:[#allocation27_spill]] %s2773_s20 }
  0x16   : > { %p2291_p6 = pnand %p1667_p5, %p2768_p1 }
  0x18   : > { %s1806_s28 = scalar_lea.hbm %s2776_s1, 256  ;;  %p2307_p8 = pneg %p2291_p6 }
  0x19   : > { %p1807_p7 = scmp.ne.s32.totalorder %s2776_s1, %s1806_s28  ;;  %p1813_p11 = scmp.lt.u32.totalorder %s1806_s28, %s2776_s1 }
  0x1b   : > { %p1809_p9 = pnand %p2307_p8, %p1807_p7 }
  0x1d   : > { %p1810_p10 = pneg %p1809_p9 }
  0x1f   : > { %p1815_p12 = pnand %p1813_p11, %p1810_p10 }
  0x21   : > { %1818 = shalt.err (!%p1815_p12)
}
  0x22   : > { %s1819_s21 = scalar_lea.vmem %s2280_s18, 256  ;;  %p1827_p5 = scmp.lt.s32.totalorder %s2280_s18, %s2280_s18 }
  0x23   : > { %p1820_p13 = scmp.ne.s32.totalorder %s2280_s18, %s1819_s21  ;;  %p1828_p4 = scmp.lt.s32.totalorder %s1819_s21, %s1819_s21 }
  0x25   : > { %p1822_p0 = pnand %p1820_p13, %p2307_p8  ;;  %p1829_p7 = por %p1828_p4, %p1827_p5 }
  0x27   : > { %p1823_p2 = pneg %p1822_p0 }
  0x29   : > { %p1830_p9 = pnand %p1829_p7, %p1823_p2 }
  0x2b   : > { %1833 = shalt.err (!%p1830_p9)
}
  0x2c   : > { %s2766_s24 = smov 64   ;;  %s2180_s26 = smov 4  }
  0x2d   : > { %1670 = dma.hbm_to_vmem [thread:$0]  (!%p2291_p6), %s2776_s1, 256, %s2280_s18, [#allocation6], %s2766_s24, %s2766_s24, %s2180_s26  }
  0x2e   : > { %s1834_s12 = scalar_lea.hbm %s2756_s3, 256 }
  0x2f   : > { %p1835_p4 = scmp.ne.s32.totalorder %s2756_s3, %s1834_s12  ;;  %p1841_p12 = scmp.lt.u32.totalorder %s1834_s12, %s2756_s3 }
  0x31   : > { %p1837_p10 = pnand %p1835_p4, %p2307_p8 }
  0x33   : > { %p1838_p11 = pneg %p1837_p10 }
  0x35   : > { %p1843_p13 = pnand %p1841_p12, %p1838_p11 }
  0x37   : > { %1846 = shalt.err (!%p1843_p13)
}
  0x38   : > { %s1847_s18 = scalar_lea.vmem %s2295_s22, 256  ;;  %p1855_p7 = scmp.lt.s32.totalorder %s2295_s22, %s2295_s22 }
  0x39   : > { %p1848_p0 = scmp.ne.s32.totalorder %s2295_s22, %s1847_s18  ;;  %p1856_p9 = scmp.lt.s32.totalorder %s1847_s18, %s1847_s18 }
  0x3b   : > { %p1850_p2 = pnand %p1848_p0, %p2307_p8  ;;  %p1857_p4 = por %p1856_p9, %p1855_p7 }
  0x3d   : > { %p1851_p5 = pneg %p1850_p2 }
  0x3f   : > { %p1858_p10 = pnand %p1857_p4, %p1851_p5 }
  0x41   : > { %1861 = shalt.err (!%p1858_p10)
}
  0x42   : > { %1676 = dma.hbm_to_vmem [thread:$0]  (!%p2291_p6), %s2756_s3, 256, %s2295_s22, [#allocation9], %s2766_s24, %s2766_s24, %s2180_s26  }
  0x43   : > { %s1862_s29 = scalar_lea.hbm %s2758_s5, 16 }
  0x44   : > { %p1863_p11 = scmp.ne.s32.totalorder %s2758_s5, %s1862_s29  ;;  %p1869_p0 = scmp.lt.u32.totalorder %s1862_s29, %s2758_s5 }
  0x46   : > { %p1865_p12 = pnand %p1863_p11, %p2307_p8 }
  0x48   : > { %p1866_p13 = pneg %p1865_p12 }
  0x4a   : > { %p1871_p2 = pnand %p1869_p0, %p1866_p13 }
  0x4c   : > { %1874 = shalt.err (!%p1871_p2)
}
  0x4d   : > { %s1875_s22 = scalar_lea.vmem %s2297_s25, 16  ;;  %s1882_s18 = scalar_lea.vmem %s2297_s25, 32 }
  0x4e   : > { %p1876_p5 = scmp.ne.s32.totalorder %s2297_s25, %s1875_s22  ;;  %p1883_p4 = scmp.lt.s32.totalorder %s2297_s25, %s2297_s25 }
  0x4f   : > { %p1884_p10 = scmp.lt.s32.totalorder %s1882_s18, %s1875_s22 }
  0x50   : > { %p1878_p7 = pnand %p1876_p5, %p2307_p8 }
  0x51   : > { %p1885_p11 = por %p1884_p10, %p1883_p4 }
  0x52   : > { %p1879_p9 = pneg %p1878_p7 }
  0x54   : > { %p1886_p12 = pnand %p1885_p11, %p1879_p9 }
  0x56   : > { %1889 = shalt.err (!%p1886_p12)
}
  0x57   : > { %1682 = dma.hbm_to_vmem [thread:$0]  (!%p2291_p6), %s2758_s5, 16, %s2297_s25, [#allocation12]  }
  0x58   : > { %s2181_s27 = smov [#allocation14]   ;;  %s2182_s29 = smov [#allocation7]  }
  0x59   : > { %s362_s28 = sshll.u32 %s2181_s27, 4  ;;  %s303_s30 = sshll.u32 %s2182_s29, 4  ;;  %s363_s28 = int_to_ptr.vmem [resolvable:$true] %s362_s28  ;;  %s304_s30 = int_to_ptr.vmem [resolvable:$true] %s303_s30 }
  0x5a   : > { %s1890_s21 = scalar_lea.hbm %s2760_s7, 16 }
  0x5b   : > { %p1891_p13 = scmp.ne.s32.totalorder %s2760_s7, %s1890_s21  ;;  %p1897_p5 = scmp.lt.u32.totalorder %s1890_s21, %s2760_s7 }
  0x5d   : > { %p1893_p0 = pnand %p1891_p13, %p2307_p8 }
  0x5f   : > { %p1894_p2 = pneg %p1893_p0 }
  0x61   : > { %p1899_p7 = pnand %p1897_p5, %p1894_p2 }
  0x63   : > { %1902 = shalt.err (!%p1899_p7)
}
  0x64   : > { %s1903_s25 = scalar_lea.vmem %s363_s28, 16  ;;  %s1910_s20 = scalar_lea.vmem %s363_s28, 32 }
  0x65   : > { %p1904_p9 = scmp.ne.s32.totalorder %s363_s28, %s1903_s25  ;;  %p1911_p11 = scmp.lt.s32.totalorder %s363_s28, %s363_s28 }
  0x66   : > { %p1912_p12 = scmp.lt.s32.totalorder %s1910_s20, %s1903_s25 }
  0x67   : > { %p1906_p4 = pnand %p1904_p9, %p2307_p8 }
  0x68   : > { %p1913_p1 = por %p1912_p12, %p1911_p11 }
  0x69   : > { %p1907_p10 = pneg %p1906_p4 }
  0x6b   : > { %p1914_p3 = pnand %p1913_p1, %p1907_p10 }
  0x6d   : > { %1917 = shalt.err (!%p1914_p3)
}
  0x6e   : > { %1688 = dma.hbm_to_vmem [thread:$0]  (!%p2291_p6), %s2760_s7, 16, %s363_s28, [#allocation15]  }
  0x6f   : > { %s1918_s17 = scalar_lea.hbm %s2755_s2, 16 }
  0x70   : > { %p1919_p13 = scmp.ne.s32.totalorder %s2755_s2, %s1918_s17  ;;  %p1925_p3 = scmp.lt.u32.totalorder %s1918_s17, %s2755_s2 }
  0x72   : > { %p1921_p0 = pnand %p1919_p13, %p2307_p8 }
  0x74   : > { %p1922_p1 = pneg %p1921_p0 }
  0x76   : > { %p1927_p2 = pnand %p1925_p3, %p1922_p1 }
  0x78   : > { %1930 = shalt.err (!%p1927_p2)
}
  0x79   : > { %s1931_s25 = scalar_lea.vmem %s304_s30, 16  ;;  %s1938_s28 = scalar_lea.vmem %s304_s30, 32 }
  0x7a   : > { %p1932_p5 = scmp.ne.s32.totalorder %s304_s30, %s1931_s25  ;;  %p1939_p4 = scmp.lt.s32.totalorder %s304_s30, %s304_s30 }
  0x7b   : > { %p1940_p10 = scmp.lt.s32.totalorder %s1938_s28, %s1931_s25 }
  0x7c   : > { %p1934_p7 = pnand %p1932_p5, %p2307_p8 }
  0x7d   : > { %p1941_p11 = por %p1940_p10, %p1939_p4 }
  0x7e   : > { %p1935_p9 = pneg %p1934_p7 }
  0x80   : > { %p1942_p12 = pnand %p1941_p11, %p1935_p9 }
  0x82   : > { %1945 = shalt.err (!%p1942_p12)
}
  0x83   : > { %1673 = dma.hbm_to_vmem [thread:$0]  (!%p2291_p6), %s2755_s2, 16, %s304_s30, [#allocation6]  }
  0x84   : > { %s2183_s29 = smov [#allocation10]   ;;  %s2184_s12 = smov [#allocation13]  }
  0x85   : > { %s327_s24 = sshll.u32 %s2183_s29, 4  ;;  %s348_s17 = sshll.u32 %s2184_s12, 4  ;;  %s328_s24 = int_to_ptr.vmem [resolvable:$true] %s327_s24  ;;  %s349_s17 = int_to_ptr.vmem [resolvable:$true] %s348_s17 }
  0x86   : > { %s1946_s18 = scalar_lea.hbm %s2757_s4, 16 }
  0x87   : > { %p1947_p13 = scmp.ne.s32.totalorder %s2757_s4, %s1946_s18  ;;  %p1953_p3 = scmp.lt.u32.totalorder %s1946_s18, %s2757_s4 }
  0x89   : > { %p1949_p0 = pnand %p1947_p13, %p2307_p8 }
  0x8b   : > { %p1950_p1 = pneg %p1949_p0 }
  0x8d   : > { %p1955_p2 = pnand %p1953_p3, %p1950_p1 }
  0x8f   : > { %1958 = shalt.err (!%p1955_p2)
}
  0x90   : > { %s1959_s30 = scalar_lea.vmem %s328_s24, 16  ;;  %s1966_s27 = scalar_lea.vmem %s328_s24, 32 }
  0x91   : > { %p1960_p5 = scmp.ne.s32.totalorder %s328_s24, %s1959_s30  ;;  %p1967_p4 = scmp.lt.s32.totalorder %s328_s24, %s328_s24 }
  0x92   : > { %p1968_p10 = scmp.lt.s32.totalorder %s1966_s27, %s1959_s30 }
  0x93   : > { %p1962_p7 = pnand %p1960_p5, %p2307_p8 }
  0x94   : > { %p1969_p11 = por %p1968_p10, %p1967_p4 }
  0x95   : > { %p1963_p9 = pneg %p1962_p7 }
  0x97   : > { %p1970_p12 = pnand %p1969_p11, %p1963_p9 }
  0x99   : > { %1973 = shalt.err (!%p1970_p12)
}
  0x9a   : > { %1679 = dma.hbm_to_vmem [thread:$0]  (!%p2291_p6), %s2757_s4, 16, %s328_s24, [#allocation9]  }
  0x9b   : > { %s1974_s18 = scalar_lea.hbm %s2759_s6, 256 }
  0x9c   : > { %p1975_p13 = scmp.ne.s32.totalorder %s2759_s6, %s1974_s18  ;;  %p1981_p3 = scmp.lt.u32.totalorder %s1974_s18, %s2759_s6 }
  0x9e   : > { %p1977_p0 = pnand %p1975_p13, %p2307_p8 }
  0xa0   : > { %p1978_p1 = pneg %p1977_p0 }
  0xa2   : > { %p1983_p2 = pnand %p1981_p3, %p1978_p1 }
  0xa4   : > { %1986 = shalt.err (!%p1983_p2)
}
  0xa5   : > { %s1987_s30 = scalar_lea.vmem %s349_s17, 256  ;;  %p1995_p4 = scmp.lt.s32.totalorder %s349_s17, %s349_s17 }
  0xa6   : > { %p1988_p5 = scmp.ne.s32.totalorder %s349_s17, %s1987_s30  ;;  %p1996_p10 = scmp.lt.s32.totalorder %s1987_s30, %s1987_s30 }
  0xa8   : > { %p1990_p7 = pnand %p1988_p5, %p2307_p8  ;;  %p1997_p11 = por %p1996_p10, %p1995_p4 }
  0xaa   : > { %p1991_p9 = pneg %p1990_p7 }
  0xac   : > { %p1998_p12 = pnand %p1997_p11, %p1991_p9 }
  0xae   : > { %2001 = shalt.err (!%p1998_p12)
}
  0xaf   : > { %s2778_s24 = smov 64   ;;  %s2185_s12 = smov [#allocation16]  }
  0xb0   : > { %1685 = dma.hbm_to_vmem [thread:$0]  (!%p2291_p6), %s2759_s6, 256, %s349_s17, [#allocation12], %s2778_s24, %s2778_s24, %s2180_s26  }
  0xb1   : > { %s372_s21 = sshll.u32 %s2185_s12, 4  ;;  %s2186_s22 = smov [#allocation17]   ;;  %s373_s21 = int_to_ptr.vmem [resolvable:$true] %s372_s21 }
  0xb2   : > { %s386_s18 = sshll.u32 %s2186_s22, 4  ;;  %s2002_s28 = scalar_lea.hbm %s2761_s8, 512  ;;  %s387_s18 = int_to_ptr.vmem [resolvable:$true] %s386_s18 }
  0xb3   : > { %p2003_p13 = scmp.ne.s32.totalorder %s2761_s8, %s2002_s28  ;;  %p2009_p3 = scmp.lt.u32.totalorder %s2002_s28, %s2761_s8 }
  0xb5   : > { %p2005_p0 = pnand %p2003_p13, %p2307_p8 }
  0xb7   : > { %p2006_p1 = pneg %p2005_p0 }
  0xb9   : > { %p2011_p2 = pnand %p2009_p3, %p2006_p1 }
  0xbb   : > { %2014 = shalt.err (!%p2011_p2)
}
  0xbc   : > { %s2015_s17 = scalar_lea.vmem %s373_s21, 512  ;;  %p2023_p4 = scmp.lt.s32.totalorder %s373_s21, %s373_s21 }
  0xbd   : > { %p2016_p5 = scmp.ne.s32.totalorder %s373_s21, %s2015_s17  ;;  %p2024_p10 = scmp.lt.s32.totalorder %s2015_s17, %s2015_s17 }
  0xbf   : > { %p2018_p7 = pnand %p2016_p5, %p2307_p8  ;;  %p2025_p11 = por %p2024_p10, %p2023_p4 }
  0xc1   : > { %p2019_p9 = pneg %p2018_p7 }
  0xc3   : > { %p2026_p12 = pnand %p2025_p11, %p2019_p9 }
  0xc5   : > { %2029 = shalt.err (!%p2026_p12)
}
  0xc6   : > { %1691 = dma.hbm_to_vmem [thread:$0]  (!%p2291_p6), %s2761_s8, 512, %s373_s21, [#allocation15], %s2778_s24, %s2778_s24, %s2180_s26  }
  0xc7   : > { %s2030_s10 = scalar_lea.hbm %s2762_s9, 16 }
  0xc8   : > { %p2031_p13 = scmp.ne.s32.totalorder %s2762_s9, %s2030_s10  ;;  %p2037_p3 = scmp.lt.u32.totalorder %s2030_s10, %s2762_s9 }
  0xca   : > { %p2033_p0 = pnand %p2031_p13, %p2307_p8 }
  0xcc   : > { %p2034_p1 = pneg %p2033_p0 }
  0xce   : > { %p2039_p2 = pnand %p2037_p3, %p2034_p1 }
  0xd0   : > { %2042 = shalt.err (!%p2039_p2)
}
  0xd1   : > { %s2043_s27 = scalar_lea.vmem %s387_s18, 16  ;;  %s2050_s26 = scalar_lea.vmem %s387_s18, 32 }
  0xd2   : > { %p2044_p5 = scmp.ne.s32.totalorder %s387_s18, %s2043_s27  ;;  %p2051_p4 = scmp.lt.s32.totalorder %s387_s18, %s387_s18 }
  0xd3   : > { %p2052_p10 = scmp.lt.s32.totalorder %s2050_s26, %s2043_s27 }
  0xd4   : > { %p2046_p7 = pnand %p2044_p5, %p2307_p8 }
  0xd5   : > { %p2053_p11 = por %p2052_p10, %p2051_p4 }
  0xd6   : > { %p2047_p9 = pneg %p2046_p7 }
  0xd8   : > { %p2054_p12 = pnand %p2053_p11, %p2047_p9 }
  0xda   : > { %2057 = shalt.err (!%p2054_p12)
}
  0xdb   : > { %1694 = dma.hbm_to_vmem [thread:$0]  (!%p2291_p6), %s2762_s9, 16, %s387_s18, [#allocation18]  }
  0xdc   : > { %s1456_s11 = sadd.s32 4294967294, %s2174_s16   ;;  %s2497_s23 = sadd.s32 1, %s2174_s16  }
  0xdd   : > { %s38_s17 = sadd.s32 1, %s2170_s15  ;;  %s35_s1 = ssub.s32 %s2174_s16, %s2497_s23 }
  0xde   : > { %p45_p8 = scmp.ne.s32.totalorder %s2170_s15, %s2166_s14  ;;  %p36_p13 = scmp.eq.s32.totalorder %s35_s1, 0 }
  0xdf   : > { %p46_p0 = scmp.eq.s32.totalorder %s2174_s16, 0  ;;  %p51_p1 = scmp.ne.s32.totalorder %s2166_s14, %s2162_s13 }
  0xe0   : > { %p264_p3 = scmp.eq.s32.totalorder %s2275_s19, 1  ;;  %p2779_p5 = scmp.eq.s32.totalorder %s2275_s19, 0 }
  0xe1   : > { %s2509_s29 = scalar_select %p36_p13, %s2170_s15, %s38_s17  }
  0xe2   : > { %p47_p2 = por %p46_p0, %p45_p8  ;;  %p2513_p7 = por %p2779_p5, %p51_p1 }
  0xe3   : > { %p2517_p6 = por %p264_p3, %p45_p8  ;;  %p270_p9 = scmp.eq.s32.totalorder %s1456_s11, 1 }
  0xe4   : > { %p1712_p4 = scmp.lt.s32.totalorder %s2174_s16, 2  ;;  %s397_s22 = sand.u32 1, %s2170_s15  }
  0xe5   : > { %s2781_s18 = scalar_select %p2517_p6, 1, 0 }
  0xe6   : > { %p2523_p10 = por %p270_p9, %p51_p1  ;;  %s1468_s25 = sshll.u32 %s397_s22, 3 }
  0xe7   : > { %s1469_s28 = sshll.u32 %s2174_s16, 7  ;;  %s401_s26 = scalar_lea.vmem [#allocation2], %s1468_s25 }
  0xe8   : > { %s2782_s10 = scalar_select %p2523_p10, 1, 0 }
  0xe9   : > { %s2531_s27 = scalar_lea.hbm %s2753_s0, %s1469_s28  ;;  %s408_s24 = sshll.u32 %s401_s26, 4  ;;  %s2537_s24 = int_to_ptr.vmem [resolvable:$true] %s408_s24 }
  0xea   : > { %p2533_p11 = pnand %p1712_p4, %p47_p2  ;;  %s398_s11 = scalar_lea.sflag [#allocation3], %s397_s22 }
  0xeb   : > { %s2058_s17 = scalar_lea.hbm %s2531_s27, 128  ;;  %s2063_s28 = scalar_lea.hbm %s2753_s0, 256 }
  0xec   : > { %p2059_p12 = scmp.ne.s32.totalorder %s2531_s27, %s2058_s17  ;;  %p2060_p8 = pneg %p2533_p11 }
  0xed   : > { %p2064_p1 = scmp.lt.u32.totalorder %s2531_s27, %s2753_s0  ;;  %p2065_p3 = scmp.lt.u32.totalorder %s2063_s28, %s2058_s17 }
  0xee   : > { %p2061_p13 = pnand %p2060_p8, %p2059_p12  ;;  %p2067_p5 = scmp.lt.u32.totalorder %s2058_s17, %s2531_s27 }
  0xef   : > { %p2066_p2 = por %p2065_p3, %p2064_p1 }
  0xf0   : > { %p2062_p0 = pneg %p2061_p13 }
  0xf1   : > { %p2068_p9 = por %p2067_p5, %p2066_p2 }
  0xf3   : > { %p2069_p4 = pnand %p2068_p9, %p2062_p0 }
  0xf5   : > { %2072 = shalt.err (!%p2069_p4)
}
  0xf6   : > { %s2073_s22 = scalar_lea.vmem %s2537_s24, 128  ;;  %s2187_s26 = smov [#allocation2]  }
  0xf7   : > { %p2074_p12 = scmp.ne.s32.totalorder %s2537_s24, %s2073_s22  ;;  %s2078_s1 = sshll.u32 %s2187_s26, 4  ;;  %s2079_s1 = int_to_ptr.vmem [resolvable:$false] %s2078_s1 }
  0xf8   : > { %s2080_s25 = scalar_lea.vmem %s2079_s1, 256  ;;  %p2081_p6 = scmp.lt.s32.totalorder %s2537_s24, %s2079_s1 }
  0xf9   : > { %p2076_p13 = pnand %p2074_p12, %p2060_p8  ;;  %p2082_p1 = scmp.lt.s32.totalorder %s2080_s25, %s2073_s22 }
  0xfb   : > { %p2077_p10 = pneg %p2076_p13  ;;  %p2083_p3 = por %p2082_p1, %p2081_p6 }
  0xfd   : > { %p2084_p2 = pnand %p2083_p3, %p2077_p10 }
  0xff   : > { %2087 = shalt.err (!%p2084_p2)
}
 0x100   : > { %1698 = dma.hbm_to_vmem [thread:$0]  (!%p2533_p11), %s2531_s27, 128, %s2537_s24, %s398_s11  }
 0x101   : > { %s2784_s17 = sld [smem:[#allocation27_spill]] }
 0x107   : > { %p2785_p0 = scmp.ne.s32.totalorder %s2784_s17, 0 }
 0x108   : > { %s2567_s28 = sand.u32 (!%p2785_p0), 1, %s2166_s14  }
 0x109   : > { %417 = sbr.rel (%p2785_p0) target bundleno = 2612 (0xa34), region = 60  ;;  %s1471_s20 = sshll.u32 (!%p2785_p0), %s2567_s28, 3 }
 0x10a   : > { %s420_s30 = scalar_lea.sflag (!%p2785_p0), [#allocation3], %s2567_s28  ;;  %s423_s22 = scalar_lea.vmem (!%p2785_p0), [#allocation2], %s1471_s20 }
 0x110   : > { %2133 = dma.done.wait (%p2513_p7), %s420_s30, 128  }
 0x111   : > { %2135 = vsyncadd (%p2513_p7), %s420_s30, 4294967168  ;;  %p2786_p6 = scmp.eq.s32.totalorder %s2275_s19, 0 }
 0x113   : > { %2137 = dma.done.wait (%p2786_p6), [#allocation6], 272   ;;  %p2787_p10 = pmov %p2786_p6 }
 0x114   : > { %p2788_p11 = pmov %p2786_p6 }
 0x115   : > { %2139 = vsyncadd (%p2787_p10), [#allocation6], 4294967024 }
 0x116   : > { %2141 = dma.done.wait (%p2788_p11), [#allocation9], 272   ;;  %p2789_p8 = pmov %p2786_p6 }
 0x117   : > { %p2790_p5 = pmov %p2786_p6 }
 0x118   : > { %2143 = vsyncadd (%p2789_p8), [#allocation9], 4294967024 }
 0x119   : > { %2145 = dma.done.wait (%p2790_p5), [#allocation12], 272   ;;  %p2791_p9 = pmov %p2790_p5 }
 0x11a   : > { %p2792_p7 = pmov %p2790_p5 }
 0x11b   : > { %2147 = vsyncadd (%p2791_p9), [#allocation12], 4294967024 }
 0x11c   : > { %2149 = dma.done.wait (%p2792_p7), [#allocation15], 528   ;;  %p2793_p4 = pmov %p2790_p5 }
 0x11e   : > { %2151 = vsyncadd (%p2793_p4), [#allocation15], 4294966768  ;;  %p2794_p12 = pmov %p2793_p4 }
 0x11f   : > { %p2795_p13 = pmov %p2793_p4 }
 0x120   : > { %2153 = dma.done.wait (%p2794_p12), [#allocation18], 16  }
 0x121   : > { %2155 = vsyncadd (%p2795_p13), [#allocation18], 4294967280  ;;  %v2188_v0 = vmov 0.0   ;;  %vm2189_vm0 = vmmov 0   ;;  %v1776_v1 = vld [vmem:[#allocation5] sm:$0xff]   ;;  %v1777_v2 = vld [vmem:[#allocation5 + $0x8] sm:$0xff]  }
 0x122   : > { %1543 = vmatprep.subr.bf16.mxu0 %v2188_v0  ;;  %1547 = vmatprep.mubr.msk.bf16.mxu0 %vm2189_vm0, %v2188_v0  ;;  %v2603_v3 = vld [vmem:[%s423_s22] sm:$0xff]  ;;  %vm522_vm1 = vcmask 261120   ;;  %s2190_s12 = smov 104   ;;  %s2191_s27 = smov 120   ;;  %vm585_vm2 = vcmask 64512   ;;  %vm829_vm3 = vcmask 1043456  }
 0x123   : > { %1551 = vmatprep.subr.bf16.mxu1 %v2188_v0  ;;  %1553 = vmatprep.mubr.msk.bf16.mxu1 %vm2189_vm0, %v2188_v0  ;;  %v498_v4 = vpack.c.bf16 %v2603_v3, %v2603_v3  ;;  %v1482_v5 = vld [vmem:[#allocation7] ss:$0 sm:$0xff]  ;;  %s2192_s24 = smov 96   ;;  %s2193_s21 = smov 112   ;;  %vm1033_vm4 = vcmask 130048   ;;  %vm1036_vm5 = vcmask 195584  }
 0x124   : > { %1544 = vmatpush3.bf16.msra.mxu0 %v1776_v1  ;;  %s2194_s11 = smov 64   ;;  %s2195_s26 = smov 8   ;;  %vm1240_vm6 = vcmask 523264  }
 0x125   : > { %1545 = vmatprep.subr.bf16.mxu0 %v2188_v0  ;;  %s2196_s1 = smov 16   ;;  %s2197_s25 = smov 24  }
 0x126   : > { %s1510_s17 = sshll.u32 %s2275_s19, 7  ;;  %s495_s30 = scalar_lea.vmem [#allocation19], %s1471_s20 }
 0x127   : > { %s1300_s22 = sshll.u32 %s495_s30, 4  ;;  %s1287_s19 = scalar_lea.sflag [#allocation4], %s2567_s28  ;;  %s2710_s22 = int_to_ptr.vmem [resolvable:$true] %s1300_s22 }
 0x128   : > { %1546 = vmatpush3.bf16.msra.mxu0 %v1777_v2  ;;  %s2088_s20 = scalar_lea.vmem %s2710_s22, 128  ;;  %p2797_p3 = scmp.ne.s32.totalorder %s2781_s18, 0 }
 0x129   : > { %1557 = vmatprep.subr.bf16.mxu0 %v2188_v0  ;;  %p2089_p1 = scmp.ne.s32.totalorder %s2710_s22, %s2088_s20 }
 0x12b   : > { %1548 = vmatmul.mubr.msk.bf16.vlgmr.msra.gmra.mrb[0].mxu0 %vm522_vm1, %v498_v4  ;;  %p2090_p2 = pnand %p2089_p1, %p2797_p3 }
 0x12c   : > { %1559 = vmatprep.mubr.msk.bf16.mxu0 %vm2189_vm0, %v2188_v0 }
 0x12d   : > { %p2091_p0 = pneg %p2090_p2 }
 0x1fe   : > { %v560_v6 = vpop.f32.mrb[0].mxu0 }
 0x1ff   : > { %v561_v7 = vadd.f32 %v1482_v5, %v560_v6  ;;  %v1549_v8 = vpop.f32.mrb[1].mxu0 }
 0x200   : > { %v563_v9 = vpop.f32.mrb[2].mxu0 }
 0x201   : > { %v2612_v10 = vpack.c.bf16 %v561_v7, %v561_v7  ;;  %v1550_v11 = vpop.f32.mrb[3].mxu0  ;;  %v566_v12 = vmul.f32 0.35355338, %v561_v7 }
 0x203   : > { %581 = vrot.lane.b32.xlu1 %v2612_v10, %s2190_s12  ;;  %577 = vrot.lane.b32.xlu0 %v2612_v10, %s2191_s27  ;;  %v567_v15 = vpack.c.bf16 %v566_v12, %v566_v12 }
 0x207   : > { %583 = vrot.lane.b32.xlu1 %v2612_v10, %s2192_s24  ;;  %579 = vrot.lane.b32.xlu0 %v2612_v10, %s2193_s21 }
 0x275   : > { %v2618_v13 = vpop.permute.xlu1 %581  ;;  %v2620_v14 = vpop.permute.xlu0 %577 }
 0x276   : > { %632 = vrot.lane.b32.xlu0 %v2620_v14, %s2192_s24 }
 0x279   : > { %v584_v16 = vpop.permute.xlu1 %583  ;;  %v2623_v17 = vpop.permute.xlu0 %579 }
 0x27a   : > { %680 = vrot.lane.b32.xlu1 %v2623_v17, %s2192_s24  ;;  %569 = vrot.lane.b32.xlu0 %v567_v15, %s2191_s27  ;;  %v590_v18 = vsel %vm585_vm2, %v584_v16, 0 }
 0x27b   : > { %1552 = vmatpush3.bf16.xpose.msra.mxu1 %v590_v18 }
 0x27c   : > { %1563 = vmatprep.subr.bf16.mxu1 %v2188_v0 }
 0x27e   : > { %728 = vrot.lane.b32.xlu1 %v2618_v13, %s2192_s24  ;;  %571 = vrot.lane.b32.xlu0 %v567_v15, %s2193_s21  ;;  %s2796_s24 = sld [smem:[#allocation29_spill]] }
 0x282   : > { %573 = vrot.lane.b32.xlu1 %v567_v15, %s2190_s12  ;;  %1554 = vmatmul.mubr.msk.bf16.vlgmr.msra.gmra.mrb[0].mxu1 %vm585_vm2, %v567_v15 }
 0x283   : > { %1565 = vmatprep.mubr.msk.bf16.mxu1 %vm2189_vm0, %v2188_v0 }
 0x284   : > { %s2708_s21 = scalar_lea.hbm %s2796_s24, %s1510_s17 }
 0x2e8   : > { %v633_v19 = vpop.permute.xlu0 %632 }
 0x2e9   : > { %v638_v20 = vsel %vm585_vm2, %v633_v19, 0 }
 0x2ea   : > { %1558 = vmatpush3.bf16.xpose.msra.mxu0 %v638_v20 }
 0x2eb   : > { %1569 = vmatprep.subr.bf16.mxu0 %v2188_v0 }
 0x2ec   : > { %v681_v21 = vpop.permute.xlu1 %680  ;;  %v570_v23 = vpop.permute.xlu0 %569 }
 0x2ed   : > { %v686_v22 = vsel %vm585_vm2, %v681_v21, 0 }
 0x2ee   : > { %1564 = vmatpush3.bf16.xpose.msra.mxu1 %v686_v22 }
 0x2ef   : > { %1575 = vmatprep.subr.bf16.mxu1 %v2188_v0 }
 0x2f0   : > { %v729_v24 = vpop.permute.xlu1 %728  ;;  %v572_v26 = vpop.permute.xlu0 %571 }
 0x2f1   : > { %v734_v25 = vsel %vm585_vm2, %v729_v24, 0  ;;  %1560 = vmatmul.mubr.msk.bf16.vlgmr.msra.gmra.mrb[4].mxu0 %vm585_vm2, %v570_v23 }
 0x2f2   : > { %1570 = vmatpush3.bf16.xpose.msra.mxu0 %v734_v25  ;;  %1571 = vmatprep.mubr.msk.bf16.mxu0 %vm2189_vm0, %v2188_v0 }
 0x2f3   : > { %1581 = vmatprep.subr.bf16.mxu0 %v2188_v0 }
 0x2f4   : > { %v574_v27 = vpop.permute.xlu1 %573 }
 0x2f5   : > { %1566 = vmatmul.mubr.msk.bf16.vlgmr.msra.gmra.mrb[4].mxu1 %vm585_vm2, %v572_v26 }
 0x2f6   : > { %1577 = vmatprep.mubr.msk.bf16.mxu1 %vm2189_vm0, %v2188_v0 }
 0x2f9   : > { %1572 = vmatmul.mubr.msk.bf16.vlgmr.msra.gmra.mrb[8].mxu0 %vm585_vm2, %v574_v27 }
 0x2fa   : > { %1583 = vmatprep.mubr.msk.bf16.mxu0 %vm2189_vm0, %v2188_v0 }
 0x355   : > { %v626_v28 = vpop.f32.mrb[0].mxu1 }
 0x356   : > { %v1555_v29 = vpop.f32.mrb[1].mxu1  ;;  %v776_v30 = vsel %vm585_vm2, %v626_v28, -inf }
 0x357   : > { %777 = vmax.xlane.f32.xlu0 %v776_v30  ;;  %v629_v31 = vpop.f32.mrb[2].mxu1 }
 0x358   : > { %v1556_v32 = vpop.f32.mrb[3].mxu1 }
 0x3c4   : > { %v674_v33 = vpop.f32.mrb[4].mxu0 }
 0x3c5   : > { %v1561_v34 = vpop.f32.mrb[5].mxu0  ;;  %v779_v35 = vsel %vm585_vm2, %v674_v33, -inf }
 0x3c6   : > { %780 = vmax.xlane.f32.xlu1 %v779_v35  ;;  %v677_v36 = vpop.f32.mrb[6].mxu0  ;;  %v1778_v34 = vld [vmem:[#allocation8] sm:$0xff]   ;;  %v1779_v35 = vld [vmem:[#allocation8 + $0x8] sm:$0xff]  }
 0x3c7   : > { %v1562_v37 = vpop.f32.mrb[7].mxu0 }
 0x3c8   : > { %v722_v38 = vpop.f32.mrb[4].mxu1 }
 0x3c9   : > { %v1567_v39 = vpop.f32.mrb[5].mxu1  ;;  %v782_v40 = vsel %vm585_vm2, %v722_v38, -inf }
 0x3ca   : > { %783 = vmax.xlane.f32.xlu0 %v782_v40  ;;  %v725_v41 = vpop.f32.mrb[6].mxu1 }
 0x3cb   : > { %v1568_v42 = vpop.f32.mrb[7].mxu1 }
 0x3cc   : > { %v770_v43 = vpop.f32.mrb[8].mxu0 }
 0x3cd   : > { %v1573_v44 = vpop.f32.mrb[9].mxu0  ;;  %v785_v45 = vsel %vm585_vm2, %v770_v43, -inf }
 0x3ce   : > { %786 = vmax.xlane.f32.xlu0 %v785_v45  ;;  %v773_v46 = vpop.f32.mrb[10].mxu0 }
 0x3cf   : > { %v1574_v47 = vpop.f32.mrb[11].mxu0 }
 0x3d7   : > { %824 = vrot.lane.b32.xlu1 %v2612_v10, %s2194_s11 }
 0x3e4   : > { %v778_v48 = vpop.xlane.xlu0 %777 }
 0x3e5   : > { %v788_v49 = vsub.f32 %v626_v28, %v778_v48 }
 0x3e7   : > { %v792_v50 = vmul.f32 1.442695, %v788_v49 }
 0x3e9   : > { %1786 = vpow2.f32 %v792_v50 }
 0x3f3   : > { %v1787_v51 = vpop.eup %1786 }
 0x3f4   : > { %v800_v52 = vsel %vm585_vm2, %v1787_v51, 0.0 }
 0x3fb   : > { %801 = vadd.xlane.f32.xlu1 %v800_v52 }
 0x453   : > { %v781_v53 = vpop.xlane.xlu1 %780 }
 0x454   : > { %v789_v54 = vsub.f32 %v674_v33, %v781_v53 }
 0x456   : > { %v794_v55 = vmul.f32 1.442695, %v789_v54 }
 0x457   : > { %v784_v56 = vpop.xlane.xlu0 %783  ;;  %v825_v57 = vpop.permute.xlu1 %824 }
 0x458   : > { %1788 = vpow2.f32 %v794_v55  ;;  %v790_v58 = vsub.f32 %v722_v38, %v784_v56  ;;  %v831_v59 = vsel %vm829_vm3, %v825_v57, 0 }
 0x459   : > { %1576 = vmatpush3.bf16.msra.mxu1 %v831_v59 }
 0x45a   : > { %v796_v60 = vmul.f32 1.442695, %v790_v58  ;;  %1587 = vmatprep.subr.bf16.mxu1 %v2188_v0 }
 0x45b   : > { %v787_v61 = vpop.xlane.xlu0 %786 }
 0x45c   : > { %1790 = vpow2.f32 %v796_v60  ;;  %v791_v62 = vsub.f32 %v770_v43, %v787_v61 }
 0x45e   : > { %v798_v63 = vmul.f32 1.442695, %v791_v62 }
 0x460   : > { %1792 = vpow2.f32 %v798_v63 }
 0x462   : > { %v1789_v1 = vpop.eup %1788 }
 0x463   : > { %v803_v2 = vsel %vm585_vm2, %v1789_v1, 0.0 }
 0x464   : > { %804 = vadd.xlane.f32.xlu0 %v803_v2 }
 0x466   : > { %v1791_v4 = vpop.eup %1790 }
 0x467   : > { %v806_v5 = vsel %vm585_vm2, %v1791_v4, 0.0 }
 0x468   : > { %807 = vadd.xlane.f32.xlu1 %v806_v5 }
 0x46a   : > { %v1793_v6 = vpop.eup %1792 }
 0x46b   : > { %v809_v7 = vsel %vm585_vm2, %v1793_v6, 0.0 }
 0x46c   : > { %810 = vadd.xlane.f32.xlu0 %v809_v7  ;;  %v1780_v7 = vld [vmem:[#allocation13] sm:$0xff]  }
 0x479   : > { %921 = vrot.lane.b32.xlu1 %v2623_v17, %s2194_s11 }
 0x47d   : > { %969 = vrot.lane.b32.xlu1 %v2618_v13, %s2194_s11 }
 0x482   : > { %873 = vrot.lane.b32.xlu0 %v2620_v14, %s2194_s11  ;;  %s2198_s11 = smov [#allocation19]  }
 0x488   : > { %v802_v8 = vpop.xlane.xlu1 %801 }
 0x489   : > { %1794 = vrcp.f32 %v802_v8 }
 0x493   : > { %v1795_v9 = vpop.eup %1794 }
 0x494   : > { %v816_v10 = vmul.f32 %v1795_v9, %v1787_v51 }
 0x496   : > { %v820_v11 = vpack.c.bf16 %v816_v10, %v816_v10 }
 0x498   : > { %1578 = vmatmul.mubr.msk.bf16.vlgmr.msra.gmra.mrb[8].mxu1 %vm585_vm2, %v820_v11 }
 0x499   : > { %1589 = vmatprep.mubr.msk.bf16.mxu1 %vm2189_vm0, %v2188_v0 }
 0x4f1   : > { %v805_v12 = vpop.xlane.xlu0 %804 }
 0x4f2   : > { %1796 = vrcp.f32 %v805_v12  ;;  %v1497_v12 = vld [vmem:[#allocation10] ss:$0 sm:$0xff] }
 0x4f5   : > { %v808_v15 = vpop.xlane.xlu1 %807 }
 0x4f6   : > { %1798 = vrcp.f32 %v808_v15 }
 0x4f9   : > { %v922_v16 = vpop.permute.xlu1 %921  ;;  %v811_v17 = vpop.xlane.xlu0 %810 }
 0x4fa   : > { %v927_v13 = vsel %vm829_vm3, %v922_v16, 0  ;;  %1800 = vrcp.f32 %v811_v17  ;;  %v1498_v16 = vld [vmem:[#allocation11] ss:$0 sm:$0xff] }
 0x4fb   : > { %1588 = vmatpush3.bf16.msra.mxu1 %v927_v13 }
 0x4fc   : > { %v1797_v14 = vpop.eup %1796  ;;  %1599 = vmatprep.subr.bf16.mxu1 %v2188_v0 }
 0x4fd   : > { %v817_v18 = vmul.f32 %v1797_v14, %v1789_v1  ;;  %v874_v19 = vpop.permute.xlu0 %873  ;;  %v970_v21 = vpop.permute.xlu1 %969 }
 0x4fe   : > { %v879_v20 = vsel %vm829_vm3, %v874_v19, 0  ;;  %v975_v25 = vsel %vm829_vm3, %v970_v21, 0  ;;  %v1783_v19 = vld [vmem:[#allocation16 + $0x8] sm:$0xff]   ;;  %v1785_v21 = vld [vmem:[#allocation16 + $0x18] sm:$0xff]  }
 0x4ff   : > { %1582 = vmatpush3.bf16.msra.mxu0 %v879_v20  ;;  %v821_v22 = vpack.c.bf16 %v817_v18, %v817_v18  ;;  %v1782_v18 = vld [vmem:[#allocation16] sm:$0xff]   ;;  %v1784_v20 = vld [vmem:[#allocation16 + $0x10] sm:$0xff]  }
 0x500   : > { %v1799_v23 = vpop.eup %1798  ;;  %1593 = vmatprep.subr.bf16.mxu0 %v2188_v0 }
 0x501   : > { %v818_v24 = vmul.f32 %v1799_v23, %v1791_v4 }
 0x502   : > { %1584 = vmatmul.mubr.msk.bf16.vlgmr.msra.gmra.mrb[12].mxu0 %vm585_vm2, %v821_v22  ;;  %v1499_v22 = vld [vmem:[#allocation14] ss:$0 sm:$0xff] }
 0x503   : > { %1594 = vmatpush3.bf16.msra.mxu0 %v975_v25  ;;  %v822_v26 = vpack.c.bf16 %v818_v24, %v818_v24  ;;  %1595 = vmatprep.mubr.msk.bf16.mxu0 %vm2189_vm0, %v2188_v0 }
 0x504   : > { %v1801_v27 = vpop.eup %1800  ;;  %1607 = vmatprep.subr.bf16.mxu0 %v2188_v0 }
 0x505   : > { %v819_v28 = vmul.f32 %v1801_v27, %v1793_v6  ;;  %1590 = vmatmul.mubr.msk.bf16.vlgmr.msra.gmra.mrb[12].mxu1 %vm585_vm2, %v822_v26 }
 0x506   : > { %1603 = vmatprep.mubr.msk.bf16.mxu1 %vm2189_vm0, %v2188_v0  ;;  %1600 = vmatpush3.bf16.msra.mxu1 %v1778_v34 }
 0x507   : > { %v823_v29 = vpack.c.bf16 %v819_v28, %v819_v28  ;;  %1601 = vmatprep.subr.bf16.mxu1 %v2188_v0 }
 0x50a   : > { %1596 = vmatmul.mubr.msk.bf16.vlgmr.msra.gmra.mrb[16].mxu0 %vm585_vm2, %v823_v29  ;;  %1602 = vmatpush3.bf16.msra.mxu1 %v1779_v35 }
 0x50b   : > { %1611 = vmatprep.mubr.msk.bf16.mxu0 %vm2189_vm0, %v2188_v0  ;;  %1615 = vmatprep.subr.bf16.mxu1 %v2188_v0 }
 0x50c   : > { %1608 = vmatpush3.bf16.msra.mxu0 %v1780_v7 }
 0x50d   : > { %1609 = vmatprep.subr.bf16.mxu0 %v2188_v0 }
 0x56b   : > { %v867_v30 = vpop.f32.mrb[8].mxu1 }
 0x56c   : > { %v1579_v31 = vpop.f32.mrb[9].mxu1  ;;  %v1017_v52 = vpack.c.bf16 %v867_v30, %v867_v30 }
 0x56d   : > { %v870_v32 = vpop.f32.mrb[10].mxu1 }
 0x56e   : > { %v1580_v33 = vpop.f32.mrb[11].mxu1 }
 0x5d5   : > { %v915_v36 = vpop.f32.mrb[12].mxu0 }
 0x5d6   : > { %v1018_v37 = vpack.c.bf16 %v915_v36, %v915_v36  ;;  %v1585_v38 = vpop.f32.mrb[13].mxu0 }
 0x5d7   : > { %v918_v39 = vpop.f32.mrb[14].mxu0 }
 0x5d8   : > { %v963_v40 = vpop.f32.mrb[12].mxu1  ;;  %1022 = vrot.lane.b32.xlu0 %v1018_v37, %s2195_s26  ;;  %v1586_v41 = vpop.f32.mrb[15].mxu0  ;;  %s2092_s26 = sshll.u32 %s2198_s11, 4  ;;  %s2093_s26 = int_to_ptr.vmem [resolvable:$false] %s2092_s26 }
 0x5d9   : > { %v1019_v42 = vpack.c.bf16 %v963_v40, %v963_v40  ;;  %v1591_v43 = vpop.f32.mrb[13].mxu1  ;;  %p2095_p6 = scmp.lt.s32.totalorder %s2710_s22, %s2093_s26 }
 0x5da   : > { %v966_v44 = vpop.f32.mrb[14].mxu1 }
 0x5db   : > { %1025 = vrot.lane.b32.xlu1 %v1019_v42, %s2196_s1  ;;  %v1592_v45 = vpop.f32.mrb[15].mxu1  ;;  %s2094_s1 = scalar_lea.vmem %s2093_s26, 256 }
 0x5dc   : > { %p2096_p10 = scmp.lt.s32.totalorder %s2094_s1, %s2088_s20 }
 0x5dd   : > { %v1011_v46 = vpop.f32.mrb[16].mxu0 }
 0x5de   : > { %v1020_v47 = vpack.c.bf16 %v1011_v46, %v1011_v46  ;;  %v1597_v48 = vpop.f32.mrb[17].mxu0  ;;  %p2097_p11 = por %p2096_p10, %p2095_p6 }
 0x5df   : > { %v1014_v49 = vpop.f32.mrb[18].mxu0 }
 0x5e0   : > { %1028 = vrot.lane.b32.xlu0 %v1020_v47, %s2197_s25  ;;  %v1598_v50 = vpop.f32.mrb[19].mxu0  ;;  %p2098_p8 = pnand %p2097_p11, %p2091_p0 }
 0x64a   : > { %v1023_v51 = vpop.permute.xlu0 %1022 }
 0x64b   : > { %v1032_v54 = vsel %vm585_vm2, %v1017_v52, %v1023_v51 }
 0x64d   : > { %v1026_v53 = vpop.permute.xlu1 %1025 }
 0x64e   : > { %v1035_v55 = vsel %vm1033_vm4, %v1032_v54, %v1026_v53 }
 0x652   : > { %v1029_v56 = vpop.permute.xlu0 %1028 }
 0x653   : > { %v1038_v57 = vsel %vm1036_vm5, %v1035_v55, %v1029_v56 }
 0x654   : > { %1604 = vmatmul.mubr.msk.bf16.vlgmr.msra.gmra.mrb[16].mxu1 %vm522_vm1, %v1038_v57 }
 0x655   : > { %1623 = vmatprep.mubr.msk.bf16.mxu1 %vm2189_vm0, %v2188_v0  ;;  %1616 = vmatpush3.bf16.msra.mxu1 %v1782_v18 }
 0x656   : > { %1617 = vmatprep.subr.bf16.mxu1 %v2188_v0 }
 0x659   : > { %1618 = vmatpush3.bf16.msra.mxu1 %v1783_v19 }
 0x65a   : > { %1619 = vmatprep.subr.bf16.mxu1 %v2188_v0 }
 0x65d   : > { %1620 = vmatpush3.bf16.msra.mxu1 %v1784_v20 }
 0x65e   : > { %1621 = vmatprep.subr.bf16.mxu1 %v2188_v0  ;;  %v1503_v0 = vld [vmem:[#allocation17] ss:$0 sm:$0xff] }
 0x661   : > { %1622 = vmatpush3.bf16.msra.mxu1 %v1785_v21 }
 0x727   : > { %v1091_v58 = vpop.f32.mrb[16].mxu1 }
 0x728   : > { %v2690_v59 = vadd.f32 %v1091_v58, %v2603_v3  ;;  %v1605_v60 = vpop.f32.mrb[17].mxu1  ;;  %v1781_v3 = vld [vmem:[#allocation13 + $0x8] sm:$0xff]  }
 0x729   : > { %v1094_v61 = vpop.f32.mrb[18].mxu1  ;;  %1610 = vmatpush3.bf16.msra.mxu0 %v1781_v3 }
 0x72a   : > { %v1606_v62 = vpop.f32.mrb[19].mxu1  ;;  %v1098_v63 = vsel %vm522_vm1, %v2690_v59, 0.0 }
 0x72b   : > { %1099 = vadd.xlane.f32.xlu1 %v1098_v63 }
 0x7b8   : > { %v1100_v1 = vpop.xlane.xlu1 %1099 }
 0x7b9   : > { %v1102_v2 = vmul.f32 0.03125, %v1100_v1 }
 0x7bb   : > { %v1103_v4 = vsub.f32 %v2690_v59, %v1102_v2 }
 0x7bd   : > { %v1104_v5 = vmul.f32 %v1103_v4, %v1103_v4 }
 0x7bf   : > { %v1105_v6 = vsel %vm522_vm1, %v1104_v5, 0.0 }
 0x7c0   : > { %1106 = vadd.xlane.f32.xlu0 %v1105_v6 }
 0x84d   : > { %v1107_v8 = vpop.xlane.xlu0 %1106 }
 0x84e   : > { %v1108_v9 = vmul.f32 0.03125, %v1107_v8 }
 0x850   : > { %v1109_v10 = vadd.f32 1e-05, %v1108_v9 }
 0x852   : > { %1802 = vrsqrt.f32 %v1109_v10 }
 0x85c   : > { %v1803_v11 = vpop.eup %1802 }
 0x85d   : > { %v1111_v15 = vmul.f32 %v1803_v11, %v1103_v4 }
 0x85f   : > { %v1119_v17 = vmul.f32 %v1497_v12, %v1111_v15 }
 0x861   : > { %v1127_v13 = vadd.f32 %v1498_v16, %v1119_v17 }
 0x863   : > { %v1128_v14 = vpack.c.bf16 %v1127_v13, %v1127_v13 }
 0x865   : > { %1612 = vmatmul.mubr.msk.bf16.vlgmr.msra.gmra.mrb[20].mxu0 %vm522_vm1, %v1128_v14 }
 0x938   : > { %v1189_v23 = vpop.f32.mrb[20].mxu0 }
 0x939   : > { %v1190_v24 = vadd.f32 %v1499_v22, %v1189_v23  ;;  %v1613_v25 = vpop.f32.mrb[21].mxu0 }
 0x93a   : > { %v1192_v26 = vpop.f32.mrb[22].mxu0 }
 0x93b   : > { %v1196_v27 = vmul.f32 0.70710677, %v1190_v24  ;;  %v1614_v28 = vpop.f32.mrb[23].mxu0  ;;  %v1195_v30 = vmul.f32 0.5, %v1190_v24 }
 0x93d   : > { %1804 = verf.f32 %v1196_v27 }
 0x947   : > { %v1805_v29 = vpop.eup %1804 }
 0x948   : > { %v1198_v31 = vadd.f32 1.0, %v1805_v29 }
 0x94a   : > { %v1199_v32 = vmul.f32 %v1198_v31, %v1195_v30 }
 0x94c   : > { %v1200_v33 = vpack.c.bf16 %v1199_v32, %v1199_v32 }
 0x94e   : > { %1624 = vmatmul.mubr.msk.bf16.vlgmr.msra.gmra.mrb[20].mxu1 %vm1240_vm6, %v1200_v33 }
 0xa21   : > { %v1278_v34 = vpop.f32.mrb[20].mxu1 }
 0xa22   : > { %v1279_v35 = vadd.f32 %v1503_v0, %v1278_v34  ;;  %v1625_v36 = vpop.f32.mrb[21].mxu1 }
 0xa23   : > { %v1281_v37 = vpop.f32.mrb[22].mxu1 }
 0xa24   : > { %v1284_v38 = vadd.f32 %v1279_v35, %v2690_v59  ;;  %v1626_v39 = vpop.f32.mrb[23].mxu1 }
 0xa26   : > { %1285 = vst.msk [vmem:[%s495_s30] sm:$0xff] %vm522_vm1, %v1284_v38 }
 0xa27   : > { %2101 = shalt.err (!%p2098_p8)
}
 0xa28   : > { %s2102_s28 = scalar_lea.hbm %s2708_s21, 128  ;;  %s2106_s30 = scalar_lea.hbm %s2796_s24, 256 }
 0xa29   : > { %p2103_p5 = scmp.ne.s32.totalorder %s2708_s21, %s2102_s28  ;;  %p2107_p4 = scmp.lt.u32.totalorder %s2708_s21, %s2796_s24 }
 0xa2a   : > { %p2108_p12 = scmp.lt.u32.totalorder %s2106_s30, %s2102_s28  ;;  %p2110_p1 = scmp.lt.u32.totalorder %s2102_s28, %s2708_s21 }
 0xa2b   : > { %p2104_p9 = pnand %p2103_p5, %p2797_p3 }
 0xa2c   : > { %p2109_p13 = por %p2108_p12, %p2107_p4 }
 0xa2d   : > { %p2105_p7 = pneg %p2104_p9 }
 0xa2e   : > { %p2111_p2 = por %p2110_p1, %p2109_p13 }
 0xa30   : > { %p2112_p0 = pnand %p2111_p2, %p2105_p7 }
 0xa32   : > { %2115 = shalt.err (!%p2112_p0)
}
 0xa33   : > { %1665 = dma.vmem_to_hbm [thread:$0]  (%p2797_p3), %s2710_s22, 128, %s2708_s21, %s1287_s19  }
 0xa34 PF: > { %s1312_s20 = sand.u32 1, %s2162_s13   ;;  %p2798_p6 = scmp.ne.s32.totalorder %s2782_s10, 0 }
 0xa35   : > { %p2799_p10 = scmp.ge.s32.totalorder %s2174_s16, 2  ;;  %s1313_s11 = scalar_lea.sflag [#allocation4], %s1312_s20 }
 0xa37   : > { %p1700_p11 = pnand %p2799_p10, %p2798_p6 }
 0xa39   : > { %2157 = dma.done.wait (!%p1700_p11), %s1313_s11, 128  }
 0xa3a   : > { %2159 = vsyncadd (!%p1700_p11), %s1313_s11, 4294967168  ;;  %p28_p8 = scmp.ge.s32.totalorder %s2497_s23, 4   ;;  %s2800_s13 = smov %s2166_s14 }
 0xa3b   : > { %s2801_s14 = smov %s2170_s15  ;;  %s2802_s15 = smov %s2509_s29 }
 0xa3c   : > { %s2803_s16 = smov %s2497_s23  ;;  %30 = sbr.rel (!%p28_p8) target bundleno = 13 (0xd), region = 141 }
 0xa43   :  { %1318 = vsyncpa [#allocation3], 1 }
 0xa44   :  { %1320 = vsyncpa [#allocation3 + $0x1], 1 }
 0xa45   :  { %1321 = vsyncpa [#allocation6], 1 }
 0xa46   :  { %1322 = vsyncpa [#allocation9], 1 }
 0xa47   :  { %1323 = vsyncpa [#allocation12], 1 }
 0xa48   :  { %1324 = vsyncpa [#allocation15], 1 }
 0xa49   :  { %1325 = vsyncpa [#allocation18], 1 }
 0xa4a   :  { %1326 = vsyncpa [#allocation4], 1 }
 0xa4b   :  { %1328 = vsyncpa [#allocation4 + $0x1], 1 }

</bundles_post_ra>
